<compile_context>
chip_gen: v7x
topology: tpu7x:2x2x1
jax: 0.10.0
libtpu: 0.0.40
codegen_flags: <defaults>
</compile_context>

<pallas_src>
import functools

import jax
import jax.numpy as jnp
from jax import lax
from jax.experimental import pallas as pl
from jax.experimental.pallas import tpu as pltpu


def _t5_layernorm_kernel(x_ref, w_ref, o_ref, *, eps, inv_hidden):
    # x_ref: (row_tile, hidden), w_ref: (1, hidden), o_ref: (row_tile, hidden)
    x_f32 = x_ref[...].astype(jnp.float32)
    # variance = mean(x^2) over the hidden (lane) axis; compile-time 1/hidden
    # turns the divide into a VPU multiply.
    variance = jnp.sum(x_f32 * x_f32, axis=-1, keepdims=True) * inv_hidden
    inv = lax.rsqrt(variance + eps)          # EUP rsqrt (free under the DMA)
    normed = x_f32 * inv
    # Match PyTorch: hidden_states.type_as(weight) BEFORE multiplying by weight.
    w = w_ref[...]
    o_ref[...] = (w * normed.astype(w.dtype)).astype(o_ref.dtype)


def _choose_row_tile(n_rows, hidden, in_b, out_b):
    """Pick a row tile: HBM-roofline-sized, VMEM-frugal, >= 8 grid steps."""
    if n_rows <= 32:
        # Full-extent block (always a legal block shape); single grid step.
        return n_rows
    # Target ~2 MiB of input bytes per block (measured roofline saturates well
    # before that per-step size on all generations).
    rt = max(32, (2 << 20) // max(1, hidden * in_b))
    # Roofline saturates by ~512-1024 rows; larger tiles only inflate live f32
    # temporaries and VMEM pressure (matters most on v7x's 64 MiB VMEM).
    rt = min(rt, 1024)
    # Hard VMEM cap: double-buffered in/out blocks + ~3 live f32 temps per elem,
    # keep tile data <= ~16 MiB (<= 50% of the 40 MiB scoped limit below).
    per_row_vmem = hidden * (2 * in_b + 2 * out_b + 12)
    rt = min(rt, max(32, (16 << 20) // per_row_vmem))
    # Keep >= 8 grid steps when there is enough work: a "parallel" axis is
    # sharded across v7x's 2 TensorCores, giving each >= 4 pipelined steps.
    if n_rows >= 8 * 32:
        rt = min(rt, pl.cdiv(n_rows, 8))
    # Sublane/packing friendly: multiple of 32 covers f32 (8 rows/vreg) and
    # bf16 (16 rows/vreg) packing.
    rt = max(32, (rt // 32) * 32)
    # If rt exceeds n_rows, fall back to the full extent (legal block shape).
    return int(min(rt, n_rows))


def t5_layer_norm(x, weight, eps=1e-6, row_tile=None):
    """T5-style RMSNorm. x: [..., hidden]; weight: [hidden]. Output dtype = weight.dtype."""
    hidden = x.shape[-1]
    orig_shape = x.shape
    x2d = x.reshape(-1, hidden)
    n_rows = x2d.shape[0]

    in_b = jnp.dtype(x.dtype).itemsize
    out_b = jnp.dtype(weight.dtype).itemsize
    w_b = jnp.dtype(weight.dtype).itemsize

    if row_tile is None:
        row_tile = _choose_row_tile(n_rows, hidden, in_b, out_b)
    row_tile = int(min(max(1, row_tile), n_rows))
    if row_tile != n_rows:
        # Blocks smaller than the full extent must be sublane-aligned.
        row_tile = max(8, (row_tile // 8) * 8)

    w2d = weight.reshape(1, hidden)
    grid = (pl.cdiv(n_rows, row_tile),)  # ragged last block handled by Pallas

    kernel = functools.partial(
        _t5_layernorm_kernel, eps=float(eps), inv_hidden=float(1.0 / hidden)
    )

    cost = pl.CostEstimate(
        flops=3 * n_rows * hidden,                      # square + sum + scale
        transcendentals=n_rows,                         # one rsqrt per row
        bytes_accessed=n_rows * hidden * (in_b + out_b) + hidden * w_b,
    )

    out = pl.pallas_call(
        kernel,
        out_shape=jax.ShapeDtypeStruct((n_rows, hidden), weight.dtype),
        grid_spec=pltpu.PrefetchScalarGridSpec(
            num_scalar_prefetch=0,
            grid=grid,
            in_specs=[
                pl.BlockSpec((row_tile, hidden), lambda i: (i, 0)),
                # Constant block index: the pipeliner keeps the weight resident
                # instead of re-fetching it every grid step.
                pl.BlockSpec((1, hidden), lambda i: (0, 0)),
            ],
            out_specs=pl.BlockSpec((row_tile, hidden), lambda i: (i, 0)),
        ),
        compiler_params=pltpu.CompilerParams(
            dimension_semantics=("parallel",),
            # Safe on every generation: v5e/v6e (128 MiB) and v7x (64 MiB);
            # tiles are capped at <= ~16 MiB of data so there is ample headroom.
            vmem_limit_bytes=40 * 1024 * 1024,
        ),
        cost_estimate=cost,
    )(x2d, w2d)

    return out.reshape(orig_shape)


def t5_layer_norm_ref(x, weight, eps=1e-6):
    variance = jnp.mean(x.astype(jnp.float32) ** 2, axis=-1, keepdims=True)
    h = x.astype(jnp.float32) * lax.rsqrt(variance + eps)
    return weight * h.astype(weight.dtype)


if __name__ == "__main__":
    key = jax.random.PRNGKey(0)

    # Test 1: small f32 case (matches the module's toy shape: batch=2, seq=8, hidden=32).
    batch, seq, hidden = 2, 8, 32
    x = jax.random.normal(key, (batch, seq, hidden), dtype=jnp.float32)
    weight = jnp.ones((hidden,), dtype=jnp.float32)  # T5LayerNorm init = ones
    out = jax.block_until_ready(t5_layer_norm(x, weight, eps=1e-6))
    ref = t5_layer_norm_ref(x, weight, eps=1e-6)
    assert out.shape == x.shape
    assert out.dtype == weight.dtype
    assert jnp.allclose(out, ref, atol=1e-5, rtol=1e-5)

    # Test 2: bf16, exercises the PyTorch cast-ordering semantics.
    k1, k2 = jax.random.split(key)
    xb = jax.random.normal(k1, (3, 5, 128), dtype=jnp.bfloat16)
    wb = (1.0 + 0.1 * jax.random.normal(k2, (128,), dtype=jnp.float32)).astype(jnp.bfloat16)
    outb = jax.block_until_ready(t5_layer_norm(xb, wb, eps=1e-6))
    refb = t5_layer_norm_ref(xb, wb, eps=1e-6)
    assert outb.shape == xb.shape and outb.dtype == jnp.bfloat16
    assert jnp.allclose(
        outb.astype(jnp.float32), refb.astype(jnp.float32), atol=2e-2, rtol=2e-2
    )

    # Test 3: ragged row count with an explicit small tile -> partial last block
    # (148 rows, tile 32 -> 5 grid steps, last block covers only 20 rows).
    k3, k4 = jax.random.split(k1)
    xr = jax.random.normal(k3, (4, 37, 256), dtype=jnp.float32)
    wr = 1.0 + 0.05 * jax.random.normal(k4, (256,), dtype=jnp.float32)
    outr = jax.block_until_ready(t5_layer_norm(xr, wr, eps=1e-6, row_tile=32))
    refr = t5_layer_norm_ref(xr, wr, eps=1e-6)
    assert outr.shape == xr.shape and outr.dtype == wr.dtype
    assert jnp.allclose(outr, refr, atol=1e-5, rtol=1e-5)

    print("KERNEL_OK")
</pallas_src>

<mosaic_0001>
module attributes {stable_mosaic.version = 11 : i64} {
  func.func @_t5_layernorm_kernel(%arg0: i32, %arg1: memref<16x32xf32, #tpu.memory_space<vmem>>, %arg2: memref<1x32xf32, #tpu.memory_space<vmem>>, %arg3: memref<16x32xf32, #tpu.memory_space<vmem>>) attributes {dimension_semantics = [#tpu.dimension_semantics<parallel>], iteration_bounds = array<i64: 1>, scalar_prefetch = 0 : i64, scratch_operands = 0 : i64, tpu.core_type = #tpu.core_type<tc>, window_params = [{transform_indices = @transform_0, window_bounds = array<i64: 16, 32>}, {pipeline_mode = #tpu.pipeline_mode<synchronous>, transform_indices = @transform_1, window_bounds = array<i64: 1, 32>}, {transform_indices = @transform_2, window_bounds = array<i64: 16, 32>}]} {
    %c0 = arith.constant 0 : index
    %c0_0 = arith.constant 0 : index
    %0 = vector.load %arg1[%c0, %c0_0] : memref<16x32xf32, #tpu.memory_space<vmem>>, vector<16x32xf32>
    %1 = arith.mulf %0, %0 : vector<16x32xf32>
    %cst = arith.constant dense<0.000000e+00> : vector<16xf32>
    %2 = vector.multi_reduction <add>, %1, %cst [1] : vector<16x32xf32> to vector<16xf32>
    %3 = vector.shape_cast %2 : vector<16xf32> to vector<16x1xf32>
    %cst_1 = arith.constant 3.125000e-02 : f32
    %4 = vector.broadcast %cst_1 : f32 to vector<16x1xf32>
    %5 = arith.mulf %3, %4 : vector<16x1xf32>
    %cst_2 = arith.constant 9.99999997E-7 : f32
    %6 = vector.broadcast %cst_2 : f32 to vector<16x1xf32>
    %7 = arith.addf %5, %6 : vector<16x1xf32>
    %8 = math.rsqrt %7 : vector<16x1xf32>
    %9 = vector.broadcast %8 : vector<16x1xf32> to vector<16x32xf32>
    %10 = arith.mulf %0, %9 : vector<16x32xf32>
    %c0_3 = arith.constant 0 : index
    %c0_4 = arith.constant 0 : index
    %11 = vector.load %arg2[%c0_3, %c0_4] : memref<1x32xf32, #tpu.memory_space<vmem>>, vector<1x32xf32>
    %12 = vector.broadcast %11 : vector<1x32xf32> to vector<16x32xf32>
    %13 = arith.mulf %12, %10 : vector<16x32xf32>
    %c0_5 = arith.constant 0 : index
    %c0_6 = arith.constant 0 : index
    %14 = vector.load %arg3[%c0_5, %c0_6] : memref<16x32xf32, #tpu.memory_space<vmem>>, vector<16x32xf32>
    tpu.vector_store %arg3[%c0_5, %c0_6], %13 {strides = array<i32>} : memref<16x32xf32, #tpu.memory_space<vmem>>, vector<16x32xf32>,
    return
  }
  func.func @transform_0(%arg0: i32) -> (i32, i32) {
    %c0_i32 = arith.constant 0 : i32
    %c0_i32_0 = arith.constant 0 : i32
    return %arg0, %c0_i32 : i32, i32
  }
  func.func @transform_1(%arg0: i32) -> (i32, i32) {
    %c0_i32 = arith.constant 0 : i32
    %c0_i32_0 = arith.constant 0 : i32
    %c0_i32_1 = arith.constant 0 : i32
    return %c0_i32, %c0_i32_0 : i32, i32
  }
  func.func @transform_2(%arg0: i32) -> (i32, i32) {
    %c0_i32 = arith.constant 0 : i32
    %c0_i32_0 = arith.constant 0 : i32
    return %arg0, %c0_i32 : i32, i32
  }
}

</mosaic_0001>

<bundles_post_ra>
// kernel: tpu_custom_call.1
= control target key start
LH: loop header
LB: loop body
LE: loop exit
PB: predicated region body
PF: predicated region fallthrough
CT: control target
= control target key end

     0   :  { %7 = vsyncpa [#allocation3], 0  ;;  %s186_s0 = inlined_call_operand.hbm [shape: f32[16,32], index: 0, kind: input, shape index: {}]   ;;  %s187_s1 = inlined_call_operand.vmem [shape: f32[1,32], index: 1, kind: input, shape index: {}]   ;;  %s188_s2 = inlined_call_operand.hbm [shape: f32[16,32], index: 2, kind: output, shape index: {}]  }
   0x1   :  { %8 = vsyncpa [#allocation4], 0  ;;  %s130_s9 = smov [#allocation2]   ;;  %s82_s13 = scalar_lea.hbm %s186_s0, 256 }
   0x2   :  { %s14_s10 = sshll.u32 %s130_s9, 4  ;;  %p83_p0 = scmp.ne.s32.totalorder %s186_s0, %s82_s13  ;;  %s15_s10 = int_to_ptr.vmem [resolvable:$true] %s14_s10 }
   0x3   :  { %p86_p1 = scmp.lt.u32.totalorder %s82_s13, %s186_s0 }
   0x5   :  { %p88_p2 = pnand %p86_p1, %p83_p0 }
   0x7   :  { %91 = shalt.err (!%p88_p2)
}
   0x8   :  { %s92_s18 = scalar_lea.vmem %s15_s10, 256  ;;  %p97_p4 = scmp.lt.s32.totalorder %s15_s10, %s15_s10 }
   0x9   :  { %p93_p3 = scmp.ne.s32.totalorder %s15_s10, %s92_s18  ;;  %p98_p5 = scmp.lt.s32.totalorder %s92_s18, %s92_s18 }
   0xb   :  { %p99_p6 = por %p98_p5, %p97_p4 }
   0xd   :  { %p100_p7 = pnand %p99_p6, %p93_p3 }
   0xf   :  { %103 = shalt.err (!%p100_p7)
}
  0x10   :  { %s131_s19 = smov 128   ;;  %s132_s20 = smov 8  }
  0x11   :  { %20 = dma.hbm_to_vmem [thread:$0]  %s186_s0, 256, %s15_s10, [#allocation3], %s131_s19, %s131_s19, %s132_s20  }
  0x12   :  { %126 = dma.done.wait [#allocation3], 256  }
  0x13   :  { %127 = vsyncadd [#allocation3], 4294967040  ;;  %v26_v0 = vld [vmem:[#allocation2] sm:$0xff]  ;;  %vm30_vm0 = vcmask 261120   ;;  %v27_v1 = vld [vmem:[#allocation2 + $0x8] sm:$0xff]  ;;  %s133_s24 = smov [#allocation5]  }
  0x14   :  { %v28_v2 = vmul.f32 %v26_v0, %v26_v0  ;;  %v29_v3 = vmul.f32 %v27_v1, %v27_v1  ;;  %v73_v13 = vld [vmem:[%s187_s1] ss:$0 sm:$0xff]  ;;  %s61_s25 = sshll.u32 %s133_s24, 4  ;;  %s62_s25 = int_to_ptr.vmem [resolvable:$true] %s61_s25 }
  0x15   :  { %s104_s26 = scalar_lea.vmem %s62_s25, 256  ;;  %p109_p9 = scmp.lt.s32.totalorder %s62_s25, %s62_s25 }
  0x16   :  { %v31_v4 = vsel %vm30_vm0, %v28_v2, 0.0  ;;  %v34_v5 = vsel %vm30_vm0, %v29_v3, 0.0  ;;  %p105_p8 = scmp.ne.s32.totalorder %s62_s25, %s104_s26  ;;  %p110_p10 = scmp.lt.s32.totalorder %s104_s26, %s104_s26 }
  0x17   :  { %32 = vadd.xlane.f32.xlu0 %v31_v4 }
  0x18   :  { %p111_p11 = por %p110_p10, %p109_p9 }
  0x1a   :  { %p112_p12 = pnand %p111_p11, %p105_p8 }
  0x1b   :  { %35 = vadd.xlane.f32.xlu0 %v34_v5 }
  0xa4   :  { %v33_v6 = vpop.xlane.xlu0 %32 }
  0xa5   :  { %v37_v7 = vmul.f32 0.03125, %v33_v6 }
  0xa7   :  { %v39_v8 = vadd.f32 1e-06, %v37_v7 }
  0xa8   :  { %v36_v9 = vpop.xlane.xlu0 %35 }
  0xa9   :  { %78 = vrsqrt.f32 %v39_v8  ;;  %v38_v10 = vmul.f32 0.03125, %v36_v9 }
  0xab   :  { %v40_v11 = vadd.f32 1e-06, %v38_v10 }
  0xad   :  { %80 = vrsqrt.f32 %v40_v11 }
  0xb3   :  { %v79_v12 = vpop.eup %78 }
  0xb4   :  { %v43_v14 = vmul.f32 %v79_v12, %v26_v0 }
  0xb6   :  { %v52_v15 = vmul.f32 %v73_v13, %v43_v14 }
  0xb7   :  { %v81_v16 = vpop.eup %80 }
  0xb8   :  { %v44_v17 = vmul.f32 %v81_v16, %v27_v1  ;;  %54 = vst.msk [vmem:[#allocation5] sm:$0xff] %vm30_vm0, %v52_v15 }
  0xba   :  { %v53_v18 = vmul.f32 %v73_v13, %v44_v17 }
  0xbc   :  { %55 = vst.msk [vmem:[#allocation5 + $0x8] sm:$0xff] %vm30_vm0, %v53_v18 }
  0xbd   :  { %115 = shalt.err (!%p112_p12)
}
  0xbe   :  { %s116_s28 = scalar_lea.hbm %s188_s2, 256 }
  0xbf   :  { %p117_p13 = scmp.ne.s32.totalorder %s188_s2, %s116_s28  ;;  %p120_p0 = scmp.lt.u32.totalorder %s116_s28, %s188_s2 }
  0xc1   :  { %p122_p1 = pnand %p120_p0, %p117_p13 }
  0xc3   :  { %125 = shalt.err (!%p122_p1)
}
  0xc4   :  { %67 = dma.vmem_to_hbm [thread:$0]  %s62_s25, 256, %s188_s2, [#allocation4], %s131_s19, %s131_s19, %s132_s20  }
  0xc5   :  { %128 = dma.done.wait [#allocation4], 256  }
  0xc6   :  { %129 = vsyncadd [#allocation4], 4294967040 }
  0xc7   :  { %71 = vsyncpa [#allocation3], 1 }
  0xc8   :  { %72 = vsyncpa [#allocation4], 1 }

</bundles_post_ra>
